<compile_context>
chip_gen: v7x
topology: tpu7x:2x2x1
jax: 0.10.0
libtpu: 0.0.40
codegen_flags: <defaults>
</compile_context>

<pallas_src>
import functools

import jax
import jax.numpy as jnp
from jax.experimental import pallas as pl
from jax.experimental.pallas import tpu as pltpu


def _round_up(v, m):
    return (v + m - 1) // m * m


def _choose_seq_tiling(L, C, itemsize, max_block_bytes):
    """Pick (Lp, TL): padded sequence length and tile rows, both multiples of 8."""
    row_bytes = max(C * itemsize, 1)
    max_rows = max(8, min(32768, (max_block_bytes // row_bytes) // 8 * 8))
    Lp = _round_up(L, 8)
    if Lp <= max_rows:
        return Lp, Lp                       # single tile along the sequence
    t = max_rows
    while t >= 8:
        if Lp % t == 0:
            return Lp, t
        t -= 8
    # No multiple-of-8 divisor within budget: pad further (adds < max_rows junk rows).
    return _round_up(L, max_rows), max_rows


def _moving_avg_kernel(pre_ref, x_ref, post_ref, o_ref, *, kernel_size, base):
    # pre_ref : (TB, 1, H, C)  left halo rows (replicate-clamped at the sequence edge)
    # x_ref   : (TB, TL, C)    main sequence tile, native (B, L, C) layout
    # post_ref: (TB, 1, H, C)  right halo rows
    # o_ref   : (TB, TL, C)    moving-average output tile
    pre = pre_ref[...][:, 0]
    mid = x_ref[...]
    post = post_ref[...][:, 0]
    out_len = o_ref.shape[1]

    # H and TL are multiples of 8 -> sublane-aligned concat (cheap vreg placement).
    xp = jnp.concatenate([pre, mid, post], axis=1).astype(jnp.float32)

    # Log-depth sliding-window sum along the sequence (sublane) axis.
    # S_w[i] = sum_{j<w} xp[i+j]; build S_k via binary decomposition of k.
    k = kernel_size
    s = xp                 # current S_w
    w = 1
    res = None             # running S_done (done = sum of processed set bits)
    done = 0
    kk = k
    while kk:
        if kk & 1:
            part = s[:, done:, :] if done else s
            if res is None:
                res = part
            else:
                n = min(res.shape[1], part.shape[1])
                res = res[:, :n, :] + part[:, :n, :]
            done += w
        kk >>= 1
        if kk:
            s = s[:, :-w, :] + s[:, w:, :]   # S_{2w}[i] = S_w[i] + S_w[i+w]
            w *= 2

    assert res.shape[1] >= base + out_len, (res.shape, base, out_len)
    out = res[:, base:base + out_len, :]
    o_ref[...] = (out * (1.0 / k)).astype(o_ref.dtype)


def moving_avg(x, kernel_size, stride=1, *, max_block_bytes=2 << 20):
    """Equivalent of moving_avg(kernel_size, stride).forward(x) with x: (B, L, C)."""
    B, L, C = x.shape
    k = int(kernel_size)
    stride = int(stride)
    if k <= 1:
        return x[:, ::stride, :]

    pad = k // 2
    if k % 2 == 0:
        left, right = pad - 1, pad
    else:
        left, right = pad, pad

    itemsize = jnp.dtype(x.dtype).itemsize
    H = max(8, _round_up(pad, 8))                      # halo rows, sublane-aligned
    Lp, TL = _choose_seq_tiling(L, C, itemsize, max_block_bytes)
    if TL < H:                                         # very large kernels: tile must hold a halo
        TL = _round_up(H, 8)
        Lp = _round_up(L, TL)
    NT = Lp // TL
    assert Lp % TL == 0 and TL % 8 == 0 and H % 8 == 0
    assert H >= left and H >= right and TL >= H
    assert Lp - TL < L                                 # every tile holds >= 1 valid row

    # Fold batches into the block so per-grid-step overhead is amortized for short L.
    tb_cap = max(1, max_block_bytes // max(TL * C * itemsize, 1))
    TB = 1
    for d in range(min(B, tb_cap), 0, -1):
        if B % d == 0:
            TB = d
            break

    # Tail-pad the sequence (replicate the last row) so it tiles evenly; rare path since
    # typical forecasting lengths are multiples of 8.
    # TODO(synk): handle a ragged last tile in-kernel instead of materializing the pad.
    if Lp != L:
        tail = jnp.broadcast_to(x[:, L - 1:L, :], (B, Lp - L, C))
        xw = jnp.concatenate([x, tail], axis=1)
    else:
        xw = x

    # Per-tile halo slabs from contiguous slices / broadcasts (no gathers, no padded copy
    # of x): they fuse the replicate edge padding with the cross-tile halo.
    pre0 = jnp.broadcast_to(x[:, None, 0:1, :], (B, 1, H, C))
    post_last = jnp.broadcast_to(x[:, None, L - 1:L, :], (B, 1, H, C))
    if NT > 1:
        pre_body = xw[:, :(NT - 1) * TL, :].reshape(B, NT - 1, TL, C)[:, :, TL - H:, :]
        post_body = xw[:, TL:, :].reshape(B, NT - 1, TL, C)[:, :, :H, :]
        halo_pre = jnp.concatenate([pre0, pre_body], axis=1)
        halo_post = jnp.concatenate([post_body, post_last], axis=1)
    else:
        halo_pre = pre0
        halo_post = post_last

    # VMEM budget: double-buffered in/out/halo blocks + f32 compute temporaries; keep the
    # cap below v7x's 64 MiB per-TensorCore VMEM with headroom for internal scratch.
    io_bytes = TB * (2 * TL + 2 * H) * C * itemsize
    tmp_bytes = 6 * TB * (TL + 2 * H) * C * 4
    vmem_limit = int(min(48 << 20, max(16 << 20, 2 * io_bytes + tmp_bytes + (2 << 20))))

    out = pl.pallas_call(
        functools.partial(_moving_avg_kernel, kernel_size=k, base=H - left),
        out_shape=jax.ShapeDtypeStruct((B, Lp, C), x.dtype),
        grid=(B // TB, NT),
        in_specs=[
            pl.BlockSpec((TB, 1, H, C), lambda b, t: (b, t, 0, 0)),
            pl.BlockSpec((TB, TL, C), lambda b, t: (b, t, 0)),
            pl.BlockSpec((TB, 1, H, C), lambda b, t: (b, t, 0, 0)),
        ],
        out_specs=pl.BlockSpec((TB, TL, C), lambda b, t: (b, t, 0)),
        compiler_params=pltpu.CompilerParams(
            dimension_semantics=("parallel", "parallel"),
            vmem_limit_bytes=vmem_limit,
        ),
    )(halo_pre, xw, halo_post)

    if Lp != L:
        out = out[:, :L, :]
    if stride != 1:
        # TODO(synk): fold stride>1 into the out BlockSpec; MSRNet's series decomposition
        # always uses stride=1, so the subsample stays wrapper-side.
        out = out[:, ::stride, :]
    return out


def _reference_moving_avg(x, kernel_size, stride):
    # Pure-JAX reference mirroring the PyTorch forward exactly.
    B, L, C = x.shape
    pad = kernel_size // 2
    if kernel_size % 2 == 0:
        left, right = pad - 1, pad
    else:
        left, right = pad, pad
    front = jnp.repeat(x[:, 0:1, :], left, axis=1)
    end = jnp.repeat(x[:, -1:, :], right, axis=1)
    xp = jnp.concatenate([front, x, end], axis=1)
    Lp = xp.shape[1]
    n_out = (Lp - kernel_size) // stride + 1
    wins = jnp.stack(
        [xp[:, t * stride:t * stride + kernel_size, :] for t in range(n_out)], axis=1
    )  # (B, n_out, k, C)
    return wins.mean(axis=2)


if __name__ == "__main__":
    key = jax.random.PRNGKey(0)
    B, L, C = 2, 16, 8
    x = jax.random.normal(key, (B, L, C), dtype=jnp.float32)

    # Primary: odd kernel, stride 1 (series-decomposition setting in MSRNet).
    out = jax.block_until_ready(moving_avg(x, 5, 1))
    ref = _reference_moving_avg(x, 5, 1)
    assert out.shape == ref.shape, (out.shape, ref.shape)
    assert jnp.allclose(out, ref, atol=1e-5, rtol=1e-5)

    # Even kernel + stride 2 (asymmetric padding and strided subsample).
    out2 = jax.block_until_ready(moving_avg(x, 4, 2))
    ref2 = _reference_moving_avg(x, 4, 2)
    assert out2.shape == ref2.shape, (out2.shape, ref2.shape)
    assert jnp.allclose(out2, ref2, atol=1e-5, rtol=1e-5)

    # Window larger than the sequence (heavy replicate clamping on both edges).
    out3 = jax.block_until_ready(moving_avg(x, 25, 1))
    ref3 = _reference_moving_avg(x, 25, 1)
    assert jnp.allclose(out3, ref3, atol=1e-5, rtol=1e-5)

    # Multi-tile path: sequence tiled along sublanes with halos (small block budget).
    x2 = jax.random.normal(jax.random.PRNGKey(1), (2, 64, 8), dtype=jnp.float32)
    out4 = jax.block_until_ready(moving_avg(x2, 7, 1, max_block_bytes=512))
    ref4 = _reference_moving_avg(x2, 7, 1)
    assert jnp.allclose(out4, ref4, atol=1e-5, rtol=1e-5)

    # Ragged length (not a multiple of 8) + multi-tile: exercises the tail-pad path.
    x3 = jax.random.normal(jax.random.PRNGKey(2), (2, 20, 8), dtype=jnp.float32)
    out5 = jax.block_until_ready(moving_avg(x3, 5, 1, max_block_bytes=512))
    ref5 = _reference_moving_avg(x3, 5, 1)
    assert out5.shape == ref5.shape, (out5.shape, ref5.shape)
    assert jnp.allclose(out5, ref5, atol=1e-5, rtol=1e-5)

    print("KERNEL_OK")
</pallas_src>

<mosaic_0001>
module attributes {stable_mosaic.version = 11 : i64} {
  func.func @_moving_avg_kernel(%arg0: i32, %arg1: i32, %arg2: memref<2x1x8x8xf32, #tpu.memory_space<vmem>>, %arg3: memref<2x16x8xf32, #tpu.memory_space<vmem>>, %arg4: memref<2x1x8x8xf32, #tpu.memory_space<vmem>>, %arg5: memref<2x16x8xf32, #tpu.memory_space<vmem>>) attributes {dimension_semantics = [#tpu.dimension_semantics<parallel>, #tpu.dimension_semantics<parallel>], iteration_bounds = array<i64: 1, 1>, scalar_prefetch = 0 : i64, scratch_operands = 0 : i64, tpu.core_type = #tpu.core_type<tc>, window_params = [{transform_indices = @transform_0, window_bounds = array<i64: 2, 1, 8, 8>}, {transform_indices = @transform_1, window_bounds = array<i64: 2, 16, 8>}, {transform_indices = @transform_2, window_bounds = array<i64: 2, 1, 8, 8>}, {transform_indices = @transform_3, window_bounds = array<i64: 2, 16, 8>}]} {
    %c0 = arith.constant 0 : index
    %c0_0 = arith.constant 0 : index
    %c0_1 = arith.constant 0 : index
    %c0_2 = arith.constant 0 : index
    %0 = vector.load %arg2[%c0, %c0_0, %c0_1, %c0_2] : memref<2x1x8x8xf32, #tpu.memory_space<vmem>>, vector<2x1x8x8xf32>
    %1 = vector.shape_cast %0 : vector<2x1x8x8xf32> to vector<2x8x8xf32>
    %c0_3 = arith.constant 0 : index
    %c0_4 = arith.constant 0 : index
    %c0_5 = arith.constant 0 : index
    %2 = vector.load %arg3[%c0_3, %c0_4, %c0_5] : memref<2x16x8xf32, #tpu.memory_space<vmem>>, vector<2x16x8xf32>
    %c0_6 = arith.constant 0 : index
    %c0_7 = arith.constant 0 : index
    %c0_8 = arith.constant 0 : index
    %c0_9 = arith.constant 0 : index
    %3 = vector.load %arg4[%c0_6, %c0_7, %c0_8, %c0_9] : memref<2x1x8x8xf32, #tpu.memory_space<vmem>>, vector<2x1x8x8xf32>
    %4 = vector.shape_cast %3 : vector<2x1x8x8xf32> to vector<2x8x8xf32>
    %5 = tpu.concatenate %1, %2, %4 in 1 : vector<2x8x8xf32>, vector<2x16x8xf32>, vector<2x8x8xf32> -> vector<2x32x8xf32>
    %6 = vector.extract_strided_slice %5 {offsets = [0, 0, 0], sizes = [2, 31, 8], strides = [1, 1, 1]} : vector<2x32x8xf32> to vector<2x31x8xf32>
    %7 = vector.extract_strided_slice %5 {offsets = [0, 1, 0], sizes = [2, 31, 8], strides = [1, 1, 1]} : vector<2x32x8xf32> to vector<2x31x8xf32>
    %8 = arith.addf %6, %7 : vector<2x31x8xf32>
    %9 = vector.extract_strided_slice %8 {offsets = [0, 0, 0], sizes = [2, 29, 8], strides = [1, 1, 1]} : vector<2x31x8xf32> to vector<2x29x8xf32>
    %10 = vector.extract_strided_slice %8 {offsets = [0, 2, 0], sizes = [2, 29, 8], strides = [1, 1, 1]} : vector<2x31x8xf32> to vector<2x29x8xf32>
    %11 = arith.addf %9, %10 : vector<2x29x8xf32>
    %12 = vector.extract_strided_slice %11 {offsets = [0, 1, 0], sizes = [2, 28, 8], strides = [1, 1, 1]} : vector<2x29x8xf32> to vector<2x28x8xf32>
    %13 = vector.extract_strided_slice %5 {offsets = [0, 0, 0], sizes = [2, 28, 8], strides = [1, 1, 1]} : vector<2x32x8xf32> to vector<2x28x8xf32>
    %14 = arith.addf %13, %12 : vector<2x28x8xf32>
    %15 = vector.extract_strided_slice %14 {offsets = [0, 6, 0], sizes = [2, 16, 8], strides = [1, 1, 1]} : vector<2x28x8xf32> to vector<2x16x8xf32>
    %cst = arith.constant 2.000000e-01 : f32
    %16 = vector.broadcast %cst : f32 to vector<2x16x8xf32>
    %17 = arith.mulf %15, %16 : vector<2x16x8xf32>
    %c0_10 = arith.constant 0 : index
    %c0_11 = arith.constant 0 : index
    %c0_12 = arith.constant 0 : index
    %18 = vector.load %arg5[%c0_10, %c0_11, %c0_12] : memref<2x16x8xf32, #tpu.memory_space<vmem>>, vector<2x16x8xf32>
    tpu.vector_store %arg5[%c0_10, %c0_11, %c0_12], %17 {strides = array<i32>} : memref<2x16x8xf32, #tpu.memory_space<vmem>>, vector<2x16x8xf32>,
    return
  }
  func.func @transform_0(%arg0: i32, %arg1: i32) -> (i32, i32, i32, i32) {
    %c0_i32 = arith.constant 0 : i32
    %c0_i32_0 = arith.constant 0 : i32
    %c0_i32_1 = arith.constant 0 : i32
    return %arg0, %arg1, %c0_i32, %c0_i32_0 : i32, i32, i32, i32
  }
  func.func @transform_1(%arg0: i32, %arg1: i32) -> (i32, i32, i32) {
    %c0_i32 = arith.constant 0 : i32
    %c0_i32_0 = arith.constant 0 : i32
    return %arg0, %arg1, %c0_i32 : i32, i32, i32
  }
  func.func @transform_2(%arg0: i32, %arg1: i32) -> (i32, i32, i32, i32) {
    %c0_i32 = arith.constant 0 : i32
    %c0_i32_0 = arith.constant 0 : i32
    %c0_i32_1 = arith.constant 0 : i32
    return %arg0, %arg1, %c0_i32, %c0_i32_0 : i32, i32, i32, i32
  }
  func.func @transform_3(%arg0: i32, %arg1: i32) -> (i32, i32, i32) {
    %c0_i32 = arith.constant 0 : i32
    %c0_i32_0 = arith.constant 0 : i32
    return %arg0, %arg1, %c0_i32 : i32, i32, i32
  }
}

</mosaic_0001>

<bundles_post_ra>
// kernel: tpu_custom_call.1
= control target key start
LH: loop header
LB: loop body
LE: loop exit
PB: predicated region body
PF: predicated region fallthrough
CT: control target
= control target key end

     0   :  { %vm30_vm0 = vcmask 1046528   ;;  %vm69_vm1 = vcmask 1045504   ;;  %vm140_vm2 = vcmask 64518   ;;  %vm142_vm3 = vcmask 64512   ;;  %s254_s0 = inlined_call_operand.vmem [shape: f32[2,1,8,8], index: 0, kind: input, shape index: {}]   ;;  %s255_s1 = inlined_call_operand.vmem [shape: f32[2,16,8], index: 1, kind: input, shape index: {}]   ;;  %s256_s2 = inlined_call_operand.vmem [shape: f32[2,1,8,8], index: 2, kind: input, shape index: {}]   ;;  %s257_s3 = inlined_call_operand.vmem [shape: f32[2,16,8], index: 3, kind: output, shape index: {}]  }
   0x1   :  { %v14_v0 = vld [vmem:[%s254_s0] sm:$0xff]  ;;  %v17_v2 = vld [vmem:[%s255_s1 + $0x8] sm:$0xff]  ;;  %v193_v8 = vld [vmem:[%s255_s1 + $0x10] sm:$0xff]  ;;  %vm144_vm4 = vcmask 62464  }
   0x2   :  { %v16_v1 = vld [vmem:[%s255_s1] sm:$0xff]  ;;  %v31_v4 = vrot.slane %v14_v0, 1  ;;  %v34_v6 = vrot.slane %v17_v2, 1  ;;  %v188_v7 = vld [vmem:[%s254_s0 + $0x8] sm:$0xff]  ;;  %v198_v10 = vld [vmem:[%s255_s1 + $0x18] sm:$0xff]  ;;  %v39_v13 = vrot.slane %v193_v8, 1 }
   0x3   :  { %v20_v3 = vld [vmem:[%s256_s2] sm:$0xff]  ;;  %v32_v5 = vrot.slane %v16_v1, 1  ;;  %v21_v11 = vld [vmem:[%s256_s2 + $0x8] sm:$0xff]  ;;  %v38_v12 = vrot.slane %v188_v7, 1  ;;  %v41_v16 = vrot.slane %v198_v10, 1 }
   0x4   :  { %v36_v9 = vrot.slane %v20_v3, 1  ;;  %v43_v17 = vrot.slane %v21_v11, 1 }
   0x5   :  { %v33_v14 = vsel %vm30_vm0, %v31_v4, %v32_v5  ;;  %v35_v15 = vsel %vm30_vm0, %v32_v5, %v34_v6  ;;  %v40_v23 = vsel %vm30_vm0, %v38_v12, %v39_v13  ;;  %v42_v24 = vsel %vm30_vm0, %v39_v13, %v41_v16 }
   0x6   :  { %v37_v18 = vsel %vm30_vm0, %v34_v6, %v36_v9  ;;  %v53_v19 = vadd.f32 %v33_v14, %v14_v0  ;;  %v54_v20 = vadd.f32 %v35_v15, %v16_v1  ;;  %v56_v21 = vadd.f32 %v36_v9, %v20_v3 }
   0x7   :  { %v55_v22 = vadd.f32 %v37_v18, %v17_v2  ;;  %v44_v25 = vsel %vm30_vm0, %v41_v16, %v43_v17  ;;  %v57_v29 = vadd.f32 %v40_v23, %v188_v7  ;;  %v58_v31 = vadd.f32 %v42_v24, %v193_v8 }
   0x8   :  { %v70_v26 = vrot.slane %v53_v19, 2  ;;  %v71_v27 = vrot.slane %v54_v20, 2  ;;  %v75_v28 = vrot.slane %v56_v21, 2  ;;  %v59_v32 = vadd.f32 %v44_v25, %v198_v10 }
   0x9   :  { %v73_v30 = vrot.slane %v55_v22, 2  ;;  %v60_v33 = vadd.f32 %v43_v17, %v21_v11  ;;  %v77_v36 = vrot.slane %v57_v29, 2  ;;  %v78_v40 = vrot.slane %v58_v31, 2 }
   0xa   :  { %v72_v34 = vsel %vm69_vm1, %v70_v26, %v71_v27  ;;  %v95_v35 = vadd.f32 %v75_v28, %v56_v21  ;;  %v80_v44 = vrot.slane %v59_v32, 2 }
   0xb   :  { %v74_v37 = vsel %vm69_vm1, %v71_v27, %v73_v30  ;;  %v92_v38 = vadd.f32 %v72_v34, %v53_v19  ;;  %v76_v39 = vsel %vm69_vm1, %v73_v30, %v75_v28  ;;  %v79_v46 = vsel %vm69_vm1, %v77_v36, %v78_v40 }
   0xc   :  { %v93_v41 = vadd.f32 %v74_v37, %v54_v20  ;;  %v94_v42 = vadd.f32 %v76_v39, %v55_v22  ;;  %v113_v43 = vrot.slane %v95_v35, 1  ;;  %v82_v47 = vrot.slane %v60_v33, 2 }
   0xd   :  { %v108_v45 = vrot.slane %v92_v38, 1  ;;  %v81_v50 = vsel %vm69_vm1, %v78_v40, %v80_v44  ;;  %v96_v51 = vadd.f32 %v79_v46, %v57_v29 }
   0xe   :  { %v109_v48 = vrot.slane %v93_v41, 1  ;;  %v111_v49 = vrot.slane %v94_v42, 1  ;;  %v97_v52 = vadd.f32 %v81_v50, %v58_v31  ;;  %v83_v53 = vsel %vm69_vm1, %v80_v44, %v82_v47 }
   0xf   :  { %v99_v54 = vadd.f32 %v82_v47, %v60_v33  ;;  %v115_v58 = vrot.slane %v96_v51, 1  ;;  %v98_v63 = vadd.f32 %v83_v53, %v59_v32 }
  0x10   :  { %v110_v55 = vsel %vm30_vm0, %v108_v45, %v109_v48  ;;  %v112_v56 = vsel %vm30_vm0, %v109_v48, %v111_v49  ;;  %v114_v57 = vsel %vm30_vm0, %v111_v49, %v113_v43  ;;  %v116_v62 = vrot.slane %v97_v52, 1 }
  0x11   :  { %v128_v59 = vadd.f32 %v110_v55, %v14_v0  ;;  %v129_v60 = vadd.f32 %v112_v56, %v16_v1  ;;  %v130_v61 = vadd.f32 %v114_v57, %v17_v2  ;;  %v120_v3 = vrot.slane %v99_v54, 1 }
  0x12   :  { %v117_v9 = vsel %vm30_vm0, %v115_v58, %v116_v62  ;;  %v118_v12 = vrot.slane %v98_v63, 1 }
  0x13   :  { %v134_v4 = vmul.f32 0.2, %v128_v59  ;;  %v135_v5 = vmul.f32 0.2, %v129_v60  ;;  %v136_v6 = vmul.f32 0.2, %v130_v61  ;;  %v131_v11 = vadd.f32 %v117_v9, %v188_v7 }
  0x14   :  { %v119_v1 = vsel %vm30_vm0, %v116_v62, %v118_v12  ;;  %v121_v2 = vsel %vm30_vm0, %v118_v12, %v120_v3 }
  0x15   :  { %141 = vst.msk [vmem:[%s257_s3 - $0x6] sm:$0xc0] %vm140_vm2, %v134_v4  ;;  %v137_v0 = vmul.f32 0.2, %v131_v11  ;;  %v132_v7 = vadd.f32 %v119_v1, %v193_v8  ;;  %v133_v13 = vadd.f32 %v121_v2, %v198_v10 }
  0x16   :  { %143 = vst.msk [vmem:[%s257_s3 + $0x2] sm:$0xff] %vm142_vm3, %v135_v5 }
  0x17   :  { %145 = vst.msk [vmem:[%s257_s3 + $0xa] sm:$0x3f] %vm144_vm4, %v136_v6  ;;  %v138_v14 = vmul.f32 0.2, %v132_v7  ;;  %v139_v15 = vmul.f32 0.2, %v133_v13 }
  0x18   :  { %146 = vst.msk [vmem:[%s257_s3 + $0xa] sm:$0xc0] %vm140_vm2, %v137_v0 }
  0x19   :  { %147 = vst.msk [vmem:[%s257_s3 + $0x12] sm:$0xff] %vm142_vm3, %v138_v14 }
  0x1a   :  { %148 = vst.msk [vmem:[%s257_s3 + $0x1a] sm:$0x3f] %vm144_vm4, %v139_v15 }

</bundles_post_ra>
